<compile_context>
chip_gen: v6e
topology: v6e:2x2x1
jax: 0.10.0
libtpu: 0.0.40
codegen_flags: <defaults>
</compile_context>

<pallas_src>
import functools
import math

import jax
import jax.numpy as jnp
from jax.experimental import pallas as pl
from jax.experimental.pallas import tpu as pltpu


# ----------------------------------------------------------------------------- kernel
def _tile_lanes(v, reps):
    """Tile a (ts, D) value `reps` times along the lane (last) axis using
    O(log reps) last-axis concatenates (always supported by Mosaic)."""
    if reps <= 1:
        return v
    out, built = v, 1
    while built * 2 <= reps:
        out = jnp.concatenate([out, out], axis=-1)
        built *= 2
    if built < reps:
        out = jnp.concatenate([out, _tile_lanes(v, reps - built)], axis=-1)
    return out


def _add_pe_kernel(x_ref, pe_ref, o_ref, *, batch):
    # x_ref : (ts, B*D)  activations; row s holds [x[s,0,:], x[s,1,:], ...]
    # pe_ref: (ts, D)    positional-encoding rows for the same sequence window
    pe = _tile_lanes(pe_ref[...], batch)                 # (ts, B*D), in-VMEM broadcast
    o_ref[...] = (x_ref[...] + pe).astype(o_ref.dtype)


# ----------------------------------------------------------------------------- wrapper
def _round_up(n, m):
    return (n + m - 1) // m * m


def _choose_seq_tile(S, row_bytes, block_bytes):
    """VMEM-byte-budgeted, 8-aligned sequence tile (rows of x per grid step)."""
    if S <= 8:
        return S                                         # full extent -> always legal
    ts = max(8, (block_bytes // max(row_bytes, 1)) // 8 * 8)
    ts = min(ts, _round_up(S, 8))
    if S >= 16:
        # Guarantee >= 2 grid steps so both v7x TensorCores get work.
        ts = min(ts, _round_up(pl.cdiv(S, 2), 8))
    return ts


def positional_encoding(x, pe, *, block_bytes=2 << 20, donate_x=False,
                        use_pallas=True):
    """PositionalEncoding.forward (eval mode): x + pe[:S].

    x : (S, B, D) sequence-major activations.
    pe: (max_len, 1, D) (or (max_len, D)) sinusoidal table, PyTorch layout.
    """
    S, B, D = x.shape
    max_len = pe.shape[0]
    if S > max_len:
        raise ValueError(f"sequence length {S} exceeds pe table max_len {max_len}")
    pe2d = pe.reshape(max_len, -1)[:S].astype(x.dtype)   # (S, D), activation dtype
    if pe2d.shape[1] != D:
        raise ValueError("pe feature dim does not match x feature dim")
    if not use_pallas:
        return x + pe2d[:, None, :]

    x2 = x.reshape(S, B * D)                             # free collapse of trailing dims
    itemsize = x.dtype.itemsize
    row_bytes = _round_up(B * D, 128) * itemsize         # lane-padded bytes per seq row
    ts = _choose_seq_tile(S, row_bytes, block_bytes)
    grid = (pl.cdiv(S, ts),)

    # Auto-pipelining keeps ~2 x-blocks + 2 out-blocks + 2 pe-blocks live; only raise
    # the scoped-VMEM limit when that footprint exceeds the smallest default (v5e 16 MiB).
    x_block_bytes = ts * row_bytes
    pe_block_bytes = ts * _round_up(D, 128) * itemsize
    footprint = 4 * x_block_bytes + 2 * pe_block_bytes + (1 << 20)
    vmem_limit = min(footprint, 120 << 20) if footprint > (16 << 20) else None
    # TODO(synk): if a single 8-row block still exceeds physical VMEM (huge B*D),
    #             the feature axis would also need tiling.

    out2 = pl.pallas_call(
        functools.partial(_add_pe_kernel, batch=B),
        grid=grid,
        in_specs=[
            pl.BlockSpec((ts, B * D), lambda i: (i, 0)),   # activations (lane-dense)
            pl.BlockSpec((ts, D), lambda i: (i, 0)),       # pe rows (no batch copy in HBM)
        ],
        out_specs=pl.BlockSpec((ts, B * D), lambda i: (i, 0)),
        out_shape=jax.ShapeDtypeStruct((S, B * D), x.dtype),
        input_output_aliases={0: 0} if donate_x else {},
        compiler_params=pltpu.CompilerParams(
            dimension_semantics=("parallel",),
            vmem_limit_bytes=vmem_limit,
        ),
    )(x2, pe2d)
    return out2.reshape(S, B, D)


# ----------------------------------------------------------------------------- params
def make_positional_encoding_table(d_model, max_len=1000, dtype=jnp.float32):
    """Matches the PyTorch __init__: interleaved sin/cos, shape (max_len, 1, d_model)."""
    position = jnp.arange(max_len, dtype=jnp.float32)[:, None]
    div_term = jnp.exp(
        jnp.arange(0, d_model, 2, dtype=jnp.float32) * (-math.log(10000.0) / d_model))
    angles = position * div_term                          # (max_len, ceil(d/2))
    table = jnp.zeros((max_len, d_model), jnp.float32)
    table = table.at[:, 0::2].set(jnp.sin(angles))
    table = table.at[:, 1::2].set(jnp.cos(angles)[:, : d_model // 2])  # odd d_model safe
    return table[:, None, :].astype(dtype)                # (max_len, 1, d_model)


# ----------------------------------------------------------------------------- main
if __name__ == "__main__":
    key = jax.random.PRNGKey(0)
    k1, k2, k3 = jax.random.split(key, 3)

    D = 128
    MAX_LEN = 64
    pe = make_positional_encoding_table(D, max_len=MAX_LEN)

    def ref(x):
        s = x.shape[0]
        pe2d = pe.reshape(MAX_LEN, D)[:s].astype(x.dtype)
        return x + pe2d[:, None, :]

    # Test 1: single-block case (S=8, B=4), f32.
    x1 = jax.random.normal(k1, (8, 4, D), dtype=jnp.float32)
    out1 = jax.block_until_ready(positional_encoding(x1, pe))
    assert out1.shape == x1.shape, out1.shape
    err1 = float(jnp.max(jnp.abs(out1 - ref(x1))))
    assert err1 < 1e-6, f"mismatch test1: {err1}"

    # Test 2: multi-step grid (S=24 -> two 16-row blocks), tiny batch, bf16,
    # with output aliased onto x (donated buffer).
    x2 = jax.random.normal(k2, (24, 2, D), dtype=jnp.bfloat16)
    out2 = jax.block_until_ready(positional_encoding(x2, pe, donate_x=True))
    assert out2.shape == x2.shape, out2.shape
    err2 = float(jnp.max(jnp.abs((out2 - ref(x2)).astype(jnp.float32))))
    assert err2 < 2e-2, f"mismatch test2: {err2}"

    # Test 3: larger batch (B=8) exercising the lane-tile broadcast + 2-step grid.
    x3 = jax.random.normal(k3, (16, 8, D), dtype=jnp.float32)
    out3 = jax.block_until_ready(positional_encoding(x3, pe))
    assert out3.shape == x3.shape, out3.shape
    err3 = float(jnp.max(jnp.abs(out3 - ref(x3))))
    assert err3 < 1e-6, f"mismatch test3: {err3}"

    print("KERNEL_OK")
</pallas_src>

<mosaic_0001>
module attributes {stable_mosaic.version = 11 : i64} {
  func.func @_add_pe_kernel(%arg0: i32, %arg1: memref<8x512xf32, #tpu.memory_space<vmem>>, %arg2: memref<8x128xf32, #tpu.memory_space<vmem>>, %arg3: memref<8x512xf32, #tpu.memory_space<vmem>>) attributes {dimension_semantics = [#tpu.dimension_semantics<parallel>], iteration_bounds = array<i64: 1>, scalar_prefetch = 0 : i64, scratch_operands = 0 : i64, tpu.core_type = #tpu.core_type<tc>, window_params = [{transform_indices = @transform_0, window_bounds = array<i64: 8, 512>}, {transform_indices = @transform_1, window_bounds = array<i64: 8, 128>}, {transform_indices = @transform_2, window_bounds = array<i64: 8, 512>}]} {
    %c0 = arith.constant 0 : index
    %c0_0 = arith.constant 0 : index
    %0 = vector.load %arg2[%c0, %c0_0] : memref<8x128xf32, #tpu.memory_space<vmem>>, vector<8x128xf32>
    %1 = tpu.concatenate %0, %0 in 1 : vector<8x128xf32>, vector<8x128xf32> -> vector<8x256xf32>
    %2 = tpu.concatenate %1, %1 in 1 : vector<8x256xf32>, vector<8x256xf32> -> vector<8x512xf32>
    %c0_1 = arith.constant 0 : index
    %c0_2 = arith.constant 0 : index
    %3 = vector.load %arg1[%c0_1, %c0_2] : memref<8x512xf32, #tpu.memory_space<vmem>>, vector<8x512xf32>
    %4 = arith.addf %3, %2 : vector<8x512xf32>
    %c0_3 = arith.constant 0 : index
    %c0_4 = arith.constant 0 : index
    %5 = vector.load %arg3[%c0_3, %c0_4] : memref<8x512xf32, #tpu.memory_space<vmem>>, vector<8x512xf32>
    tpu.vector_store %arg3[%c0_3, %c0_4], %4 {strides = array<i32>} : memref<8x512xf32, #tpu.memory_space<vmem>>, vector<8x512xf32>,
    return
  }
  func.func @transform_0(%arg0: i32) -> (i32, i32) {
    %c0_i32 = arith.constant 0 : i32
    %c0_i32_0 = arith.constant 0 : i32
    return %arg0, %c0_i32 : i32, i32
  }
  func.func @transform_1(%arg0: i32) -> (i32, i32) {
    %c0_i32 = arith.constant 0 : i32
    %c0_i32_0 = arith.constant 0 : i32
    return %arg0, %c0_i32 : i32, i32
  }
  func.func @transform_2(%arg0: i32) -> (i32, i32) {
    %c0_i32 = arith.constant 0 : i32
    %c0_i32_0 = arith.constant 0 : i32
    return %arg0, %c0_i32 : i32, i32
  }
}

</mosaic_0001>

<bundles_post_ra>
// kernel: tpu_custom_call.1
= control target key start
LH: loop header
LB: loop body
LE: loop exit
PB: predicated region body
PF: predicated region fallthrough
CT: control target
= control target key end

     0   :  { %7 = vsyncpa [#allocation3], 0  ;;  %s161_s0 = inlined_call_operand.hbm [shape: f32[8,512], index: 0, kind: input, shape index: {}]   ;;  %s162_s1 = inlined_call_operand.hbm [shape: f32[8,128], index: 1, kind: input, shape index: {}]   ;;  %s163_s2 = inlined_call_operand.hbm [shape: f32[8,512], index: 2, kind: output, shape index: {}]  }
   0x1   :  { %8 = vsyncpa [#allocation6], 0 }
   0x2   :  { %9 = vsyncpa [#allocation4], 0  ;;  %s134_s9 = smov [#allocation2]   ;;  %s135_s11 = smov [#allocation5]  }
   0x3   :  { %s16_s10 = sshll.u32 %s134_s9, 4  ;;  %s26_s12 = sshll.u32 %s135_s11, 4  ;;  %s17_s10 = int_to_ptr.vmem [resolvable:$true] %s16_s10  ;;  %s27_s12 = int_to_ptr.vmem [resolvable:$true] %s26_s12 }
   0x4   :  { %s76_s13 = scalar_lea.vmem %s17_s10, 512  ;;  %p81_p1 = scmp.lt.s32.totalorder %s17_s10, %s17_s10 }
   0x5   :  { %p77_p0 = scmp.ne.s32.totalorder %s17_s10, %s76_s13  ;;  %p82_p2 = scmp.lt.s32.totalorder %s76_s13, %s76_s13 }
   0x7   :  { %p83_p3 = por %p82_p2, %p81_p1 }
   0x9   :  { %p84_p4 = pnand %p83_p3, %p77_p0 }
   0xb   :  { %87 = shalt.err (!%p84_p4)
}
   0xc   :  { %19 = dma.hbm_to_vmem [thread:$0]  %s161_s0, 512, %s17_s10, [#allocation3]  }
   0xd   :  { %s96_s16 = scalar_lea.vmem %s27_s12, 128  ;;  %p101_p6 = scmp.lt.s32.totalorder %s27_s12, %s27_s12 }
   0xe   :  { %p97_p5 = scmp.ne.s32.totalorder %s27_s12, %s96_s16  ;;  %p102_p7 = scmp.lt.s32.totalorder %s96_s16, %s96_s16 }
  0x10   :  { %p103_p8 = por %p102_p7, %p101_p6 }
  0x12   :  { %p104_p9 = pnand %p103_p8, %p97_p5 }
  0x14   :  { %107 = shalt.err (!%p104_p9)
}
  0x15   :  { %29 = dma.hbm_to_vmem [thread:$0]  %s162_s1, 128, %s27_s12, [#allocation6]  }
  0x16   :  { %128 = dma.done.wait [#allocation3], 512  }
  0x17   :  { %129 = vsyncadd [#allocation3], 4294966784 }
  0x18   :  { %130 = dma.done.wait [#allocation6], 128  }
  0x19   :  { %131 = vsyncadd [#allocation6], 4294967168  ;;  %s136_s19 = smov [#allocation7]   ;;  %v36_v0 = vld [vmem:[#allocation5] sm:$0xff]  ;;  %v38_v2 = vld [vmem:[#allocation2 + $0x8] sm:$0xff] }
  0x1a   :  { %s55_s20 = sshll.u32 %s136_s19, 4  ;;  %v37_v1 = vld [vmem:[#allocation2] sm:$0xff]  ;;  %v42_v4 = vadd.f32 %v38_v2, %v36_v0  ;;  %v39_v5 = vld [vmem:[#allocation2 + $0x10] sm:$0xff]  ;;  %v40_v6 = vld [vmem:[#allocation2 + $0x18] sm:$0xff]  ;;  %s56_s20 = int_to_ptr.vmem [resolvable:$true] %s55_s20 }
  0x1b   :  { %v41_v3 = vadd.f32 %v37_v1, %v36_v0  ;;  %v43_v7 = vadd.f32 %v39_v5, %v36_v0  ;;  %v44_v8 = vadd.f32 %v40_v6, %v36_v0  ;;  %s108_s0 = scalar_lea.vmem %s56_s20, 512  ;;  %p113_p11 = scmp.lt.s32.totalorder %s56_s20, %s56_s20 }
  0x1c   :  { %46 = vst [vmem:[#allocation7 + $0x8] sm:$0xff] %v42_v4  ;;  %p109_p10 = scmp.ne.s32.totalorder %s56_s20, %s108_s0  ;;  %p114_p12 = scmp.lt.s32.totalorder %s108_s0, %s108_s0 }
  0x1d   :  { %45 = vst [vmem:[#allocation7] sm:$0xff] %v41_v3  ;;  %47 = vst [vmem:[#allocation7 + $0x10] sm:$0xff] %v43_v7 }
  0x1e   :  { %48 = vst [vmem:[#allocation7 + $0x18] sm:$0xff] %v44_v8  ;;  %p115_p13 = por %p114_p12, %p113_p11 }
  0x20   :  { %p116_p0 = pnand %p115_p13, %p109_p10 }
  0x22   :  { %119 = shalt.err (!%p116_p0)
}
  0x23   :  { %58 = dma.vmem_to_hbm [thread:$0]  %s56_s20, 512, %s163_s2, [#allocation4]  }
  0x24   :  { %132 = dma.done.wait [#allocation4], 512  }
  0x25   :  { %133 = vsyncadd [#allocation4], 4294966784 }
  0x26   :  { %62 = vsyncpa [#allocation3], 1 }
  0x27   :  { %63 = vsyncpa [#allocation6], 1 }
  0x28   :  { %64 = vsyncpa [#allocation4], 1 }

</bundles_post_ra>
